<compile_context>
chip_gen: v7x
topology: tpu7x:2x2x1
jax: 0.10.0
libtpu: 0.0.40
codegen_flags: <defaults>
</compile_context>

<pallas_src>
import functools
import math

import jax
import jax.numpy as jnp
from jax import lax
from jax.experimental import pallas as pl
from jax.experimental.pallas import tpu as pltpu


def _round_up(x, m):
    return (x + m - 1) // m * m


def _pick_batch_block(batch, per_batch_bytes, budget_bytes):
    """Largest divisor of `batch` whose block fits `budget_bytes` while keeping
    at least two steps on the leading "parallel" grid axis (so v7x's second
    TensorCore gets work; single-TC v5e/v6e only pay ~0.35us per extra step)."""
    best = 1
    for bb in range(1, batch + 1):
        if batch % bb:
            continue
        if bb * per_batch_bytes > budget_bytes:
            continue
        if batch >= 2 and batch // bb < 2:
            continue
        best = bb
    return best


# --------------------------------------------------------------------------
# Fast path: the whole (Lq, Lk) problem for a batch block fits in one tile.
# No online-softmax scratch, no init/finalize phases, exact normalization.
# --------------------------------------------------------------------------
def _sdpa_single_tile_kernel(q_ref, k_ref, v_ref, o_ref, *, scale):
    q = q_ref[...]                                   # (bb, Lq, D)
    if scale != 1.0:
        q = q * scale
    # q @ k^T without materializing k.T: contract the D axis, batch over dim 0.
    s = lax.dot_general(
        q, k_ref[...],
        dimension_numbers=(((2,), (2,)), ((0,), (0,))),
        preferred_element_type=jnp.float32)          # (bb, Lq, Lk) f32
    m = jnp.max(s, axis=-1, keepdims=True)
    p = jnp.exp(s - m)
    l = jnp.sum(p, axis=-1, keepdims=True)
    o = lax.dot_general(
        p.astype(v_ref.dtype), v_ref[...],
        dimension_numbers=(((2,), (1,)), ((0,), (0,))),
        preferred_element_type=jnp.float32)          # (bb, Lq, Dv) f32
    # TODO(synk): torch.nn.Dropout(p=1) in *training* mode would zero the
    # output; eval-mode (identity) dropout semantics are implemented here.
    o_ref[...] = (o / l).astype(o_ref.dtype)         # exact divide, once per tile


# --------------------------------------------------------------------------
# Flash path: online softmax across KV tiles (for large Lq / Lk).
# --------------------------------------------------------------------------
def _flash_kernel(q_ref, k_ref, v_ref, o_ref, m_sc, l_sc, acc_sc, q_sc, *,
                  scale, tk, lk_valid, needs_mask, compute_dtype):
    kv = pl.program_id(2)

    @pl.when(kv == 0)
    def _():
        m_sc[...] = jnp.full_like(m_sc, -jnp.inf)
        l_sc[...] = jnp.zeros_like(l_sc)
        acc_sc[...] = jnp.zeros_like(acc_sc)
        # Scale q ONCE per q-tile (q block is KV-invariant / resident); cast to
        # the (bf16) compute dtype here as well.
        qv = q_ref[...]
        if scale != 1.0:
            qv = qv * scale
        q_sc[...] = qv.astype(q_sc.dtype)

    k = k_ref[...].astype(compute_dtype)             # (bb, tk, D)
    s = lax.dot_general(
        q_sc[...], k,
        dimension_numbers=(((2,), (2,)), ((0,), (0,))),
        preferred_element_type=jnp.float32)          # (bb, tq, tk) f32

    if needs_mask:
        # Only the last KV tile can reach past Lk (cdiv grid => every tile
        # starts inside [0, Lk)), so for earlier tiles this is an all-true
        # identity.  The iota/compare is only (1, 1, tk)-wide; broadcasting
        # handles bb/tq.
        key_idx = lax.broadcasted_iota(jnp.int32, (1, 1, tk), 2)
        valid = key_idx < (lk_valid - kv * tk)
        s = jnp.where(valid, s, -1e30)

    m_prev = m_sc[...]
    m_new = jnp.maximum(m_prev, s.max(axis=-1, keepdims=True))
    alpha = jnp.exp(m_prev - m_new)
    p = jnp.exp(s - m_new)
    l_sc[...] = alpha * l_sc[...] + p.sum(axis=-1, keepdims=True)
    acc_sc[...] = alpha * acc_sc[...] + lax.dot_general(
        p.astype(compute_dtype), v_ref[...].astype(compute_dtype),
        dimension_numbers=(((2,), (1,)), ((0,), (0,))),
        preferred_element_type=jnp.float32)
    m_sc[...] = m_new

    @pl.when(kv == pl.num_programs(2) - 1)
    def _():
        # TODO(synk): eval-mode (identity) dropout semantics, see fast path.
        inv_l = pl.reciprocal(l_sc[...], approx=True)
        o_ref[...] = (acc_sc[...] * inv_l).astype(o_ref.dtype)


def sdpa_pallas(q, k, v, key_size):
    B, Lq, D = q.shape
    _, Lk, _ = k.shape
    Dv = v.shape[-1]
    scale = 1.0 / math.sqrt(key_size)
    itemsize = jnp.dtype(q.dtype).itemsize

    # Per-batch double-buffered input/output block bytes + f32 score temps.
    per_batch_block_bytes = 2 * (Lq * (D + Dv) + Lk * (D + Dv)) * itemsize
    score_bytes = 4 * Lq * Lk * 4

    single_tile = (
        Lq <= 1024 and Lk <= 2048
        and per_batch_block_bytes + score_bytes <= 8 * 1024 * 1024
    )

    if single_tile:
        # ------------------------- fast path -----------------------------
        bb = _pick_batch_block(B, per_batch_block_bytes + score_bytes,
                               16 * 1024 * 1024)
        grid = (B // bb,)

        vmem_need = bb * (per_batch_block_bytes + score_bytes)
        vmem_limit = int(min(40 * 1024 * 1024,
                             max(16 * 1024 * 1024, 2 * vmem_need)))

        cost = pl.CostEstimate(
            flops=2 * B * Lq * Lk * (D + Dv),
            transcendentals=B * Lq * Lk,
            bytes_accessed=(q.size + k.size + v.size + B * Lq * Dv) * itemsize,
        )

        return pl.pallas_call(
            functools.partial(_sdpa_single_tile_kernel, scale=scale),
            out_shape=jax.ShapeDtypeStruct((B, Lq, Dv), q.dtype),
            grid_spec=pltpu.PrefetchScalarGridSpec(
                num_scalar_prefetch=0,
                grid=grid,
                in_specs=[
                    pl.BlockSpec((bb, Lq, D), lambda b: (b, 0, 0)),
                    pl.BlockSpec((bb, Lk, D), lambda b: (b, 0, 0)),
                    pl.BlockSpec((bb, Lk, Dv), lambda b: (b, 0, 0)),
                ],
                out_specs=pl.BlockSpec((bb, Lq, Dv), lambda b: (b, 0, 0)),
            ),
            compiler_params=pltpu.CompilerParams(
                dimension_semantics=("parallel",),
                vmem_limit_bytes=vmem_limit,
            ),
            cost_estimate=cost,
        )(q, k, v)

    # --------------------------- flash path ------------------------------
    # bf16 matmul operands (f32 accumulation) for MXU throughput on all gens.
    compute_dtype = jnp.bfloat16 if q.dtype == jnp.float32 else q.dtype
    comp_itemsize = jnp.dtype(compute_dtype).itemsize

    # tk capped at 256 so double-buffered K/V blocks + f32 (tq,tk) temporaries
    # + the f32 accumulator stay well inside v7x's 64 MiB VMEM (v5e/v6e could
    # take 512, but 256 is within a few % and one code path is simpler).
    tq = min(256, _round_up(Lq, 16))
    tk = min(256, _round_up(Lk, 16))
    nq = pl.cdiv(Lq, tq)
    nk = pl.cdiv(Lk, tk)

    per_batch_bytes = (
        2 * (tq * D) * itemsize                       # q block (dbl-buffered)
        + 2 * tk * (D + Dv) * itemsize                # k/v blocks
        + 2 * tq * Dv * itemsize                      # output block
        + tq * (2 + Dv) * 4 + tq * D * comp_itemsize  # scratch (m, l, acc, q)
        + 3 * tq * tk * 4                             # s / p / mask temporaries
    )
    bb = _pick_batch_block(B, per_batch_bytes, 16 * 1024 * 1024)
    vmem_limit = int(min(40 * 1024 * 1024,
                         max(16 * 1024 * 1024, 2 * bb * per_batch_bytes)))

    needs_mask = (Lk % tk) != 0

    kernel = functools.partial(
        _flash_kernel, scale=scale, tk=tk, lk_valid=Lk,
        needs_mask=needs_mask, compute_dtype=compute_dtype)

    # Cost estimate reflects the tiles actually computed (incl. partial ones).
    lq_c, lk_c = nq * tq, nk * tk
    cost = pl.CostEstimate(
        flops=2 * B * lq_c * lk_c * (D + Dv),
        transcendentals=B * lq_c * (lk_c + nk),       # p exps + alpha exps
        bytes_accessed=(B * Lq * D + B * nq * Lk * (D + Dv) + B * Lq * Dv)
        * itemsize,
    )

    return pl.pallas_call(
        kernel,
        out_shape=jax.ShapeDtypeStruct((B, Lq, Dv), q.dtype),
        grid_spec=pltpu.PrefetchScalarGridSpec(
            num_scalar_prefetch=0,
            grid=(B // bb, nq, nk),
            in_specs=[
                pl.BlockSpec((bb, tq, D), lambda b, i, j: (b, i, 0)),
                pl.BlockSpec((bb, tk, D), lambda b, i, j: (b, j, 0)),
                pl.BlockSpec((bb, tk, Dv), lambda b, i, j: (b, j, 0)),
            ],
            out_specs=pl.BlockSpec((bb, tq, Dv), lambda b, i, j: (b, i, 0)),
            scratch_shapes=[
                pltpu.VMEM((bb, tq, 1), jnp.float32),     # running max
                pltpu.VMEM((bb, tq, 1), jnp.float32),     # running denom
                pltpu.VMEM((bb, tq, Dv), jnp.float32),    # running accumulator
                pltpu.VMEM((bb, tq, D), compute_dtype),   # scaled q (resident)
            ],
        ),
        compiler_params=pltpu.CompilerParams(
            dimension_semantics=("parallel", "parallel", "arbitrary"),
            vmem_limit_bytes=vmem_limit,
        ),
        cost_estimate=cost,
    )(q, k, v)


def sdpa_ref(q, k, v, key_size):
    scale = 1.0 / math.sqrt(key_size)
    qk = jnp.einsum("bqd,bkd->bqk", q, k) * scale
    p = jax.nn.softmax(qk, axis=-1)
    return jnp.einsum("bqk,bkv->bqv", p, v)


if __name__ == "__main__":
    # Shapes straight from the PyTorch spec: q (5,4,200), k (5,6,200), v (5,6,100).
    B, Lq, Lk, D, Dv = 5, 4, 6, 200, 100
    key_size = 1

    key = jax.random.PRNGKey(0)
    kq, kk, kv_ = jax.random.split(key, 3)
    q = 0.25 * jax.random.normal(kq, (B, Lq, D), dtype=jnp.float32)
    k = 0.25 * jax.random.normal(kk, (B, Lk, D), dtype=jnp.float32)
    v = jax.random.normal(kv_, (B, Lk, Dv), dtype=jnp.float32)

    out = jax.block_until_ready(sdpa_pallas(q, k, v, key_size))
    ref = sdpa_ref(q, k, v, key_size)

    assert out.shape == (B, Lq, Dv)
    assert jnp.allclose(out, ref, atol=2e-2, rtol=2e-2), float(
        jnp.max(jnp.abs(out - ref)))

    print("KERNEL_OK")
</pallas_src>

<mosaic_0001>
module attributes {stable_mosaic.version = 11 : i64} {
  func.func @_sdpa_single_tile_kernel(%arg0: i32, %arg1: memref<1x4x200xf32, #tpu.memory_space<vmem>>, %arg2: memref<1x6x200xf32, #tpu.memory_space<vmem>>, %arg3: memref<1x6x100xf32, #tpu.memory_space<vmem>>, %arg4: memref<1x4x100xf32, #tpu.memory_space<vmem>>) attributes {dimension_semantics = [#tpu.dimension_semantics<parallel>], iteration_bounds = array<i64: 5>, scalar_prefetch = 0 : i64, scratch_operands = 0 : i64, tpu.core_type = #tpu.core_type<tc>, window_params = [{transform_indices = @transform_0, window_bounds = array<i64: 1, 4, 200>}, {transform_indices = @transform_1, window_bounds = array<i64: 1, 6, 200>}, {transform_indices = @transform_2, window_bounds = array<i64: 1, 6, 100>}, {transform_indices = @transform_3, window_bounds = array<i64: 1, 4, 100>}]} {
    %c0 = arith.constant 0 : index
    %c0_0 = arith.constant 0 : index
    %c0_1 = arith.constant 0 : index
    %0 = vector.load %arg1[%c0, %c0_0, %c0_1] : memref<1x4x200xf32, #tpu.memory_space<vmem>>, vector<1x4x200xf32>
    %c0_2 = arith.constant 0 : index
    %c0_3 = arith.constant 0 : index
    %c0_4 = arith.constant 0 : index
    %1 = vector.load %arg2[%c0_2, %c0_3, %c0_4] : memref<1x6x200xf32, #tpu.memory_space<vmem>>, vector<1x6x200xf32>
    %cst = arith.constant dense<0.000000e+00> : vector<1x4x6xf32>
    %2 = tpu.matmul %0, %1, %cst {dimension_numbers = #tpu.dot_dimension_numbers<[2], [2], [1], [1], [0, 0, 0, 1, 1, 1], [0], [0]>} : vector<1x4x200xf32>, vector<1x6x200xf32>, vector<1x4x6xf32> -> vector<1x4x6xf32>
    %cst_5 = arith.constant dense<0xFF800000> : vector<1x4xf32>
    %3 = vector.multi_reduction <maximumf>, %2, %cst_5 [2] : vector<1x4x6xf32> to vector<1x4xf32>
    %4 = vector.shape_cast %3 : vector<1x4xf32> to vector<1x4x1xf32>
    %5 = vector.broadcast %4 : vector<1x4x1xf32> to vector<1x4x6xf32>
    %6 = arith.subf %2, %5 : vector<1x4x6xf32>
    %7 = math.exp %6 : vector<1x4x6xf32>
    %cst_6 = arith.constant dense<0.000000e+00> : vector<1x4xf32>
    %8 = vector.multi_reduction <add>, %7, %cst_6 [2] : vector<1x4x6xf32> to vector<1x4xf32>
    %9 = vector.shape_cast %8 : vector<1x4xf32> to vector<1x4x1xf32>
    %c0_7 = arith.constant 0 : index
    %c0_8 = arith.constant 0 : index
    %c0_9 = arith.constant 0 : index
    %10 = vector.load %arg3[%c0_7, %c0_8, %c0_9] : memref<1x6x100xf32, #tpu.memory_space<vmem>>, vector<1x6x100xf32>
    %cst_10 = arith.constant dense<0.000000e+00> : vector<1x4x100xf32>
    %11 = tpu.matmul %7, %10, %cst_10 {dimension_numbers = #tpu.dot_dimension_numbers<[2], [1], [1], [2], [0, 0, 0, 1, 1, 2], [0], [0]>} : vector<1x4x6xf32>, vector<1x6x100xf32>, vector<1x4x100xf32> -> vector<1x4x100xf32>
    %12 = vector.broadcast %9 : vector<1x4x1xf32> to vector<1x4x100xf32>
    %13 = arith.divf %11, %12 : vector<1x4x100xf32>
    %c0_11 = arith.constant 0 : index
    %c0_12 = arith.constant 0 : index
    %c0_13 = arith.constant 0 : index
    %14 = vector.load %arg4[%c0_11, %c0_12, %c0_13] : memref<1x4x100xf32, #tpu.memory_space<vmem>>, vector<1x4x100xf32>
    tpu.vector_store %arg4[%c0_11, %c0_12, %c0_13], %13 {strides = array<i32>} : memref<1x4x100xf32, #tpu.memory_space<vmem>>, vector<1x4x100xf32>,
    return
  }
  func.func @transform_0(%arg0: i32) -> (i32, i32, i32) {
    %c0_i32 = arith.constant 0 : i32
    %c0_i32_0 = arith.constant 0 : i32
    %c0_i32_1 = arith.constant 0 : i32
    return %arg0, %c0_i32, %c0_i32_0 : i32, i32, i32
  }
  func.func @transform_1(%arg0: i32) -> (i32, i32, i32) {
    %c0_i32 = arith.constant 0 : i32
    %c0_i32_0 = arith.constant 0 : i32
    %c0_i32_1 = arith.constant 0 : i32
    return %arg0, %c0_i32, %c0_i32_0 : i32, i32, i32
  }
  func.func @transform_2(%arg0: i32) -> (i32, i32, i32) {
    %c0_i32 = arith.constant 0 : i32
    %c0_i32_0 = arith.constant 0 : i32
    %c0_i32_1 = arith.constant 0 : i32
    return %arg0, %c0_i32, %c0_i32_0 : i32, i32, i32
  }
  func.func @transform_3(%arg0: i32) -> (i32, i32, i32) {
    %c0_i32 = arith.constant 0 : i32
    %c0_i32_0 = arith.constant 0 : i32
    %c0_i32_1 = arith.constant 0 : i32
    return %arg0, %c0_i32, %c0_i32_0 : i32, i32, i32
  }
}

</mosaic_0001>

<bundles_post_ra>
// kernel: tpu_custom_call.1
= control target key start
LH: loop header
LB: loop body
LE: loop exit
PB: predicated region body
PF: predicated region fallthrough
CT: control target
= control target key end

     0   :  { %8 = vsyncpa [#allocation3], 0  ;;  %s1075_s0 = inlined_call_operand.hbm [shape: f32[5,4,200], index: 0, kind: input, shape index: {}]   ;;  %s1076_s1 = inlined_call_operand.hbm [shape: f32[5,6,200], index: 1, kind: input, shape index: {}]   ;;  %s1077_s2 = inlined_call_operand.hbm [shape: f32[5,6,100], index: 2, kind: input, shape index: {}]   ;;  %s1078_s3 = inlined_call_operand.hbm [shape: f32[5,4,100], index: 3, kind: output, shape index: {}]  }
   0x1   :  { %10 = vsyncpa [#allocation3 + $0x1], 0 }
   0x2   :  { %11 = vsyncpa [#allocation6], 0 }
   0x3   :  { %13 = vsyncpa [#allocation6 + $0x1], 0 }
   0x4   :  { %14 = vsyncpa [#allocation4], 0 }
   0x5   :  { %16 = vsyncpa [#allocation4 + $0x1], 0  ;;  %s844_s12 = smov 0   ;;  %s846_s13 = smov 0  }
   0x6   :  { %s848_s14 = smov 0   ;;  %s850_s15 = smov 0  }
   0x7 LB: > { %s865_s16 = sadd.s32 4294967295, %s816_s15   ;;  %s560_s17 = sadd.s32 4294967294, %s816_s15   ;;  %s816_s15 = sphi %s850_s15, %s1103_s15   ;;  %s812_s14 = sphi %s848_s14, %s1102_s14   ;;  %s808_s13 = sphi %s846_s13, %s1101_s13   ;;  %s804_s12 = sphi %s844_s12, %s1100_s12  }
   0x8   : > { %s869_s18 = sadd.s32 1, %s816_s15   ;;  %s29_s19 = sadd.s32 1, %s812_s14 }
   0x9   : > { %s26_s20 = ssub.s32 %s816_s15, %s869_s18  ;;  %p36_p0 = scmp.ne.s32.totalorder %s812_s14, %s808_s13 }
   0xa   : > { %p27_p1 = scmp.eq.s32.totalorder %s26_s20, 0  ;;  %p37_p2 = scmp.eq.s32.totalorder %s816_s15, 0 }
   0xb   : > { %p42_p3 = scmp.ne.s32.totalorder %s808_s13, %s804_s12  ;;  %p43_p4 = scmp.eq.s32.totalorder %s865_s16, 0 }
   0xc   : > { %s881_s21 = scalar_select %p27_p1, %s812_s14, %s29_s19  }
   0xd   : > { %p38_p5 = por %p37_p2, %p36_p0  ;;  %p883_p6 = por %p43_p4, %p42_p3 }
   0xe   : > { %p118_p7 = scmp.eq.s32.totalorder %s865_s16, 4  ;;  %p124_p8 = scmp.eq.s32.totalorder %s560_s17, 4 }
   0xf   : > { %s1085_s22 = scalar_select %p883_p6, 1, 0 }
  0x10   : > { %p615_p9 = scmp.lt.s32.totalorder %s816_s15, 5  ;;  %p889_p10 = por %p118_p7, %p36_p0 }
  0x11   : > { %p893_p11 = por %p124_p8, %p42_p3  ;;  %s898_s25 = sand.u32 1, %s812_s14  }
  0x12   : > { %s1086_s23 = scalar_select %p889_p10, 1, 0 }
  0x13   : > { %s1087_s24 = scalar_select %p893_p11, 1, 0 }
  0x14   : > { %p900_p12 = pnand %p615_p9, %p38_p5  ;;  %s163_s27 = sand.u32 1, %s816_s15  }
  0x15   : > { %s566_s28 = sshll.u32 %s898_s25, 4  ;;  %s585_s29 = sshll.u32 %s816_s15, 8 }
  0x16   : > { %s1088_s26 = scalar_select %p900_p12, 1, 0 }
  0x17   : > { %s910_s5 = scalar_lea.hbm %s1076_s1, %s585_s29  ;;  %s167_s6 = scalar_lea.vmem [#allocation5], %s566_s28 }
  0x18   : > { %s175_s7 = sshll.u32 %s167_s6, 4  ;;  %s915_s8 = scalar_lea.sflag [#allocation6], %s163_s27  ;;  %s912_s7 = int_to_ptr.vmem [resolvable:$true] %s175_s7 }
  0x19   : > { %s656_s9 = scalar_lea.hbm %s910_s5, 256  ;;  %p921_p1 = pneg %p900_p12 }
  0x1a   : > { %p657_p0 = scmp.ne.s32.totalorder %s910_s5, %s656_s9  ;;  %s661_s19 = scalar_lea.hbm %s1076_s1, 1280 }
  0x1b   : > { %p662_p4 = scmp.lt.u32.totalorder %s910_s5, %s1076_s1  ;;  %p663_p5 = scmp.lt.u32.totalorder %s661_s19, %s656_s9 }
  0x1c   : > { %p659_p2 = pnand %p921_p1, %p657_p0  ;;  %p665_p8 = scmp.lt.u32.totalorder %s656_s9, %s910_s5 }
  0x1d   : > { %p664_p7 = por %p663_p5, %p662_p4 }
  0x1e   : > { %p660_p3 = pneg %p659_p2 }
  0x1f   : > { %p666_p9 = por %p665_p8, %p664_p7 }
  0x21   : > { %p667_p13 = pnand %p666_p9, %p660_p3 }
  0x23   : > { %670 = shalt.err (!%p667_p13)
}
  0x24   : > { %s671_s27 = scalar_lea.vmem %s912_s7, 256  ;;  %s818_s29 = smov [#allocation5]  }
  0x25   : > { %p672_p0 = scmp.ne.s32.totalorder %s912_s7, %s671_s27  ;;  %s676_s30 = sshll.u32 %s818_s29, 4  ;;  %s677_s30 = int_to_ptr.vmem [resolvable:$false] %s676_s30 }
  0x26   : > { %s678_s4 = scalar_lea.vmem %s677_s30, 512  ;;  %p679_p10 = scmp.lt.s32.totalorder %s912_s7, %s677_s30 }
  0x27   : > { %p674_p2 = pnand %p672_p0, %p921_p1  ;;  %p680_p6 = scmp.lt.s32.totalorder %s678_s4, %s671_s27 }
  0x29   : > { %p675_p11 = pneg %p674_p2  ;;  %p681_p4 = por %p680_p6, %p679_p10 }
  0x2b   : > { %p682_p5 = pnand %p681_p4, %p675_p11 }
  0x2d   : > { %685 = shalt.err (!%p682_p5)
}
  0x2e   : > { %607 = dma.hbm_to_vmem [thread:$0]  (!%p900_p12), %s910_s5, 256, %s912_s7, %s915_s8  }
  0x2f   : > { %p198_p13 = scmp.lt.s32.totalorder %s816_s15, 6  ;;  %s1081_s6 = sshll.u32 %s898_s25, 3 }
  0x30   : > { %s1082_s9 = sshll.u32 %s816_s15, 7  ;;  %p1090_p6 = scmp.ge.s32.totalorder %s816_s15, 1 }
  0x31   : > { %s959_s20 = scalar_lea.hbm %s1075_s0, %s1082_s9  ;;  %s148_s5 = scalar_lea.vmem [#allocation2], %s1081_s6 }
  0x32   : > { %p950_p10 = pnand %p1090_p6, %p198_p13  ;;  %s156_s7 = sshll.u32 %s148_s5, 4  ;;  %s157_s7 = int_to_ptr.vmem [resolvable:$true] %s156_s7 }
  0x33   : > { %s145_s28 = scalar_lea.sflag [#allocation3], %s898_s25  ;;  %s686_s27 = scalar_lea.hbm %s959_s20, 128 }
  0x34   : > { %s1091_s11 = scalar_select %p950_p10, 1, 0 }
  0x35   : > { %p687_p11 = scmp.ne.s32.totalorder %s959_s20, %s686_s27  ;;  %s691_s4 = scalar_lea.hbm %s1075_s0, 640 }
  0x36   : > { %p692_p8 = scmp.lt.u32.totalorder %s959_s20, %s1075_s0  ;;  %p693_p9 = scmp.lt.u32.totalorder %s691_s4, %s686_s27 }
  0x37   : > { %p689_p3 = pnand %p687_p11, %p921_p1  ;;  %p695_p2 = scmp.lt.u32.totalorder %s686_s27, %s959_s20 }
  0x38   : > { %p694_p0 = por %p693_p9, %p692_p8 }
  0x39   : > { %p690_p7 = pneg %p689_p3 }
  0x3a   : > { %p696_p4 = por %p695_p2, %p694_p0 }
  0x3c   : > { %p697_p5 = pnand %p696_p4, %p690_p7 }
  0x3e   : > { %700 = shalt.err (!%p697_p5)
}
  0x3f   : > { %s701_s5 = scalar_lea.vmem %s157_s7, 128  ;;  %s819_s6 = smov [#allocation2]  }
  0x40   : > { %p702_p13 = scmp.ne.s32.totalorder %s157_s7, %s701_s5  ;;  %s706_s9 = sshll.u32 %s819_s6, 4  ;;  %s707_s9 = int_to_ptr.vmem [resolvable:$false] %s706_s9 }
  0x41   : > { %s708_s29 = scalar_lea.vmem %s707_s9, 256  ;;  %p709_p3 = scmp.lt.s32.totalorder %s157_s7, %s707_s9 }
  0x42   : > { %p704_p6 = pnand %p702_p13, %p921_p1  ;;  %p710_p10 = scmp.lt.s32.totalorder %s708_s29, %s701_s5 }
  0x44   : > { %p705_p11 = pneg %p704_p6  ;;  %p711_p12 = por %p710_p10, %p709_p3 }
  0x46   : > { %p712_p8 = pnand %p711_p12, %p705_p11 }
  0x48   : > { %715 = shalt.err (!%p712_p8)
}
  0x49   : > { %p1092_p9 = scmp.ne.s32.totalorder %s1088_s26, 0  ;;  %s1093_s27 = sshll.u32 %s816_s15, 7 }
  0x4a   : > { %s986_s17 = scalar_lea.hbm %s1077_s2, %s1093_s27  ;;  %s1094_s6 = sshll.u32 %s898_s25, 3 }
  0x4b   : > { %604 = dma.hbm_to_vmem [thread:$0]  (!%p1092_p9), %s959_s20, 128, %s157_s7, %s145_s28  }
  0x4c   : > { %s186_s9 = scalar_lea.vmem [#allocation7], %s1094_s6  ;;  %s716_s5 = scalar_lea.hbm %s986_s17, 128 }
  0x4d   : > { %s193_s19 = sshll.u32 %s186_s9, 4  ;;  %p717_p12 = scmp.ne.s32.totalorder %s986_s17, %s716_s5  ;;  %s194_s19 = int_to_ptr.vmem [resolvable:$true] %s193_s19 }
  0x4e   : > { %s721_s28 = scalar_lea.hbm %s1077_s2, 640  ;;  %p722_p0 = scmp.lt.u32.totalorder %s986_s17, %s1077_s2 }
  0x4f   : > { %p719_p10 = pnand %p717_p12, %p921_p1  ;;  %p723_p2 = scmp.lt.u32.totalorder %s721_s28, %s716_s5 }
  0x50   : > { %p725_p5 = scmp.lt.u32.totalorder %s716_s5, %s986_s17 }
  0x51   : > { %p720_p7 = pneg %p719_p10  ;;  %p724_p4 = por %p723_p2, %p722_p0 }
  0x53   : > { %p726_p13 = por %p725_p5, %p724_p4 }
  0x55   : > { %p727_p6 = pnand %p726_p13, %p720_p7 }
  0x57   : > { %730 = shalt.err (!%p727_p6)
}
  0x58   : > { %s731_s25 = scalar_lea.vmem %s194_s19, 128  ;;  %s820_s30 = smov [#allocation7]  }
  0x59   : > { %p732_p11 = scmp.ne.s32.totalorder %s194_s19, %s731_s25  ;;  %s736_s4 = sshll.u32 %s820_s30, 4  ;;  %s737_s4 = int_to_ptr.vmem [resolvable:$false] %s736_s4 }
  0x5a   : > { %s738_s6 = scalar_lea.vmem %s737_s4, 256  ;;  %p739_p12 = scmp.lt.s32.totalorder %s194_s19, %s737_s4 }
  0x5b   : > { %p734_p3 = pnand %p732_p11, %p921_p1  ;;  %p740_p10 = scmp.lt.s32.totalorder %s738_s6, %s731_s25 }
  0x5d   : > { %p735_p8 = pneg %p734_p3  ;;  %p741_p9 = por %p740_p10, %p739_p12 }
  0x5f   : > { %p742_p0 = pnand %p741_p9, %p735_p8 }
  0x61   : > { %745 = shalt.err (!%p742_p0)
}
  0x62   : > { %p1095_p2 = scmp.ne.s32.totalorder %s1088_s26, 0  ;;  %p1096_p7 = scmp.ne.s32.totalorder %s1091_s11, 0 }
  0x63   : > { %s1011_s10 = sand.u32 (!%p1096_p7), 1, %s808_s13   ;;  %p1097_p1 = scmp.ne.s32.totalorder (!%p1096_p7), %s1085_s22, 0 }
  0x64   : > { %610 = dma.hbm_to_vmem [thread:$0]  (!%p1095_p2), %s986_s17, 128, %s194_s19, %s915_s8  }
  0x65   : > { %202 = sbr.rel (%p1096_p7) target bundleno = 715 (0x2cb), region = 32  ;;  %s572_s9 = sshll.u32 (!%p1096_p7), %s1011_s10, 3 }
  0x66   : > { %s205_s5 = scalar_lea.sflag (!%p1096_p7), [#allocation3], %s1011_s10  ;;  %s208_s20 = scalar_lea.vmem (!%p1096_p7), [#allocation2], %s572_s9 }
  0x6c   : > { %791 = dma.done.wait (%p1097_p1), %s205_s5, 128  }
  0x6d   : > { %793 = vsyncadd (%p1097_p1), %s205_s5, 4294967168  ;;  %s213_s26 = sand.u32 1, %s865_s16   ;;  %s573_s8 = sshll.u32 %s1011_s10, 4 }
  0x6e   : > { %s214_s11 = scalar_lea.sflag [#allocation6], %s213_s26  ;;  %s217_s17 = scalar_lea.vmem [#allocation5], %s573_s8 }
  0x6f   : > { %795 = dma.done.wait (%p1097_p1), %s214_s11, 384  }
  0x70   : > { %797 = vsyncadd (%p1097_p1), %s214_s11, 4294966912  ;;  %vm264_vm0 = vcmask 588800   ;;  %v261_v0 = vld [vmem:[%s217_s17 + $0x8] sm:$0x3f]  ;;  %v260_v1 = vld [vmem:[%s217_s17] sm:$0x3f] }
  0x71   : > { %v259_v2 = vld [vmem:[%s208_s20] sm:$0xff]  ;;  %576 = vmatprep.subr.msk.mxu0 %vm264_vm0, %v261_v0  ;;  %vm340_vm1 = vcmask 44032   ;;  %vm355_vm2 = vcmask 1045504   ;;  %v821_v7 = vmov 0.0   ;;  %s226_s22 = scalar_lea.vmem [#allocation7], %s572_s9  ;;  %vm822_vm3 = vmmov 0  }
  0x72   : > { %v263_v3 = vcombine.high %v259_v2, %v259_v2  ;;  %271 = vmatpush1.xpose.msra.mxu0 %v260_v1  ;;  %588 = vmatprep.subr.mxu1 %v821_v7  ;;  %v350_v8 = vld [vmem:[%s226_s22] sm:$0x3f]  ;;  %vm351_vm4 = vcmask 48128   ;;  %s575_s19 = sshll.u32 %s1011_s10, 2  ;;  %s581_s7 = sshll.u32 %s865_s16, 6  ;;  %vm431_vm5 = vcmask 814080  }
  0x73   : > { %590 = vmatprep.mubr.msk.f32.mxu1 %vm822_vm3, %v821_v7  ;;  %589 = vmatpush3.msk.msra.mxu1 %vm355_vm2, %v350_v8  ;;  %s258_s28 = scalar_lea.vmem [#allocation8], %s575_s19  ;;  %s1032_s30 = scalar_lea.hbm %s1078_s3, %s581_s7 }
  0x74   : > { %577 = vmatprep.mubr.msk.f32.mxu0 %vm264_vm0, %v263_v3  ;;  %s447_s29 = sshll.u32 %s258_s28, 4  ;;  %s434_s4 = scalar_lea.sflag [#allocation4], %s1011_s10  ;;  %s1034_s29 = int_to_ptr.vmem [resolvable:$true] %s447_s29 }
  0x75   : > { %335 = vmatmul.mubr.f32.vlgmr.msra.gmra.mrb[0].mxu0 %v259_v2  ;;  %s746_s16 = scalar_lea.vmem %s1034_s29, 64  ;;  %p1098_p4 = scmp.ne.s32.totalorder %s1086_s23, 0 }
  0x76   : > { %p747_p9 = scmp.ne.s32.totalorder %s1034_s29, %s746_s16  ;;  %s823_s6 = smov [#allocation8]  }
  0x77   : > { %s750_s9 = sshll.u32 %s823_s6, 4  ;;  %s751_s9 = int_to_ptr.vmem [resolvable:$false] %s750_s9 }
  0x78   : > { %p748_p5 = pnand %p747_p9, %p1098_p4  ;;  %s752_s5 = scalar_lea.vmem %s751_s9, 128 }
  0x79   : > { %p753_p6 = scmp.lt.s32.totalorder %s1034_s29, %s751_s9  ;;  %p754_p11 = scmp.lt.s32.totalorder %s752_s5, %s746_s16 }
  0x7a   : > { %p749_p13 = pneg %p748_p5 }
  0x7b   : > { %p755_p3 = por %p754_p11, %p753_p6 }
  0x7d   : > { %p756_p8 = pnand %p755_p3, %p749_p13 }
 0x148   : > { %v336_v4 = vpop.f32.mrb[0].mxu0 }
 0x149   : > { %v338_v5 = vpop.f32.mrb[1].mxu0  ;;  %v341_v6 = vsel %vm340_vm1, %v336_v4, -inf }
 0x14a   : > { %342 = vmax.xlane.f32.xlu0 %v341_v6 }
 0x1d7   : > { %v343_v9 = vpop.xlane.xlu0 %342 }
 0x1d8   : > { %v344_v10 = vsub.f32 %v336_v4, %v343_v9 }
 0x1da   : > { %v345_v11 = vmul.f32 1.442695, %v344_v10 }
 0x1dc   : > { %652 = vpow2.f32 %v345_v11 }
 0x1e6   : > { %v653_v12 = vpop.eup %652 }
 0x1e7   : > { %591 = vmatmul.mubr.msk.f32.vlgmr.msra.gmra.mrb[0].mxu1 %vm351_vm4, %v653_v12  ;;  %v347_v13 = vsel %vm340_vm1, %v653_v12, 0.0 }
 0x1e8   : > { %348 = vadd.xlane.f32.xlu0 %v347_v13 }
 0x275   : > { %v349_v14 = vpop.xlane.xlu0 %348 }
 0x276   : > { %654 = vrcp.f32 %v349_v14 }
 0x280   : > { %v655_v15 = vpop.eup %654 }
 0x2ba   : > { %v425_v16 = vpop.f32.mrb[0].mxu1 }
 0x2bb   : > { %v430_v17 = vmul.f32 %v655_v15, %v425_v16  ;;  %v592_v18 = vpop.f32.mrb[1].mxu1 }
 0x2bd   : > { %432 = vst.msk [vmem:[%s258_s28] sm:$0xf] %vm431_vm5, %v430_v17 }
 0x2be   : > { %759 = shalt.err (!%p756_p8)
}
 0x2bf   : > { %s760_s10 = scalar_lea.hbm %s1032_s30, 64  ;;  %s764_s8 = scalar_lea.hbm %s1078_s3, 320 }
 0x2c0   : > { %p761_p12 = scmp.ne.s32.totalorder %s1032_s30, %s760_s10  ;;  %p765_p2 = scmp.lt.u32.totalorder %s1032_s30, %s1078_s3 }
 0x2c1   : > { %p766_p7 = scmp.lt.u32.totalorder %s764_s8, %s760_s10  ;;  %p768_p9 = scmp.lt.u32.totalorder %s760_s10, %s1032_s30 }
 0x2c2   : > { %p762_p10 = pnand %p761_p12, %p1098_p4 }
 0x2c3   : > { %p767_p1 = por %p766_p7, %p765_p2 }
 0x2c4   : > { %p763_p0 = pneg %p762_p10 }
 0x2c5   : > { %p769_p5 = por %p768_p9, %p767_p1 }
 0x2c7   : > { %p770_p13 = pnand %p769_p5, %p763_p0 }
 0x2c9   : > { %773 = shalt.err (!%p770_p13)
}
 0x2ca   : > { %599 = dma.vmem_to_hbm [thread:$0]  (%p1098_p4), %s1034_s29, 64, %s1032_s30, %s434_s4  }
 0x2cb PF: > { %p616_p6 = scmp.ge.s32.totalorder %s816_s15, 2  ;;  %s459_s22 = sand.u32 1, %s804_s12  }
 0x2cc   : > { %p1099_p11 = scmp.ne.s32.totalorder %s1087_s24, 0  ;;  %s460_s19 = scalar_lea.sflag [#allocation4], %s459_s22 }
 0x2ce   : > { %p612_p3 = pnand %p616_p6, %p1099_p11 }
 0x2d0   : > { %799 = dma.done.wait (!%p612_p3), %s460_s19, 64  }
 0x2d1   : > { %801 = vsyncadd (!%p612_p3), %s460_s19, 4294967232  ;;  %p19_p8 = scmp.ge.s32.totalorder %s869_s18, 7   ;;  %s1100_s12 = smov %s808_s13 }
 0x2d2   : > { %s1101_s13 = smov %s812_s14  ;;  %s1102_s14 = smov %s881_s21 }
 0x2d3   : > { %s1103_s15 = smov %s869_s18  ;;  %21 = sbr.rel (!%p19_p8) target bundleno = 7 (0x7), region = 101 }
 0x2da   :  { %465 = vsyncpa [#allocation3], 1 }
 0x2db   :  { %467 = vsyncpa [#allocation3 + $0x1], 1 }
 0x2dc   :  { %468 = vsyncpa [#allocation6], 1 }
 0x2dd   :  { %470 = vsyncpa [#allocation6 + $0x1], 1 }
 0x2de   :  { %471 = vsyncpa [#allocation4], 1 }
 0x2df   :  { %473 = vsyncpa [#allocation4 + $0x1], 1 }

</bundles_post_ra>
